<compile_context>
chip_gen: v7x
topology: tpu7x:2x2x1
jax: 0.10.0
libtpu: 0.0.40
codegen_flags: <defaults>
</compile_context>

<pallas_src>
import functools

import jax
import jax.numpy as jnp
from jax import lax
from jax.experimental import pallas as pl
from jax.experimental.pallas import tpu as pltpu


def _layernorm_kernel(x_ref, gamma_ref, beta_ref, o_ref, *, eps, n_feat, padded):
    # ---- reduction passes (f32 accumulation) --------------------------------
    xf = x_ref[...].astype(jnp.float32)                          # (R, Fp)
    # Padded lanes hold zeros, so a plain sum over the padded width already
    # equals the sum over the real n_feat lanes.
    mean = jnp.sum(xf, axis=-1, keepdims=True) * (1.0 / n_feat)  # (R, 1)
    sq = (xf - mean) * (xf - mean)
    if padded:
        lane = lax.broadcasted_iota(jnp.int32, (1, xf.shape[-1]), 1)
        sq = jnp.where(lane < n_feat, sq, 0.0)
    # torch.std default is unbiased -> divide by (N - 1); compile-time recip.
    var = jnp.sum(sq, axis=-1, keepdims=True) * (1.0 / (n_feat - 1))
    std = jnp.sqrt(var)
    # Exact per-row reciprocal (keeps the 1e-5 tolerance); shape is (R, 1).
    inv = pl.reciprocal(std + eps, approx=False)

    # ---- normalize -----------------------------------------------------------
    # Recompute (x - mean) from a fresh native-dtype read of the VMEM tile so
    # no tile-sized f32 temporary from the reductions stays live across the
    # barrier; this is the only tile-sized store in the kernel.
    xo = x_ref[...].astype(jnp.float32)
    y = (xo - mean) * inv * gamma_ref[...] + beta_ref[...]
    o_ref[...] = y.astype(o_ref.dtype)


def _vmem_capacity_bytes():
    """Trace-time VMEM capacity query; conservative fallback if unavailable."""
    try:
        return int(pltpu.get_tpu_info().vmem_capacity_bytes)
    except Exception:
        return 64 << 20  # v7x per-TensorCore (smallest current part)


def _choose_tile_rows(rows, feat_p, itemsize, vmem_bytes):
    """Sublane-aligned row tile, sized from the chip's VMEM capacity.

    Target per-buffer tile ~= VMEM/16, capped at 8 MiB:
      v5e/v6e (128 MiB VMEM) -> 8 MiB tiles; v7x (64 MiB) -> 4 MiB tiles.
    Total pipeline footprint (2x in + 2x out double buffers + f32 reduction
    scratch) then stays comfortably below physical capacity on every part.
    """
    sublane = max(8, 32 // itemsize)  # 8 rows for f32, 16 for bf16
    target_bytes = min(8 << 20, vmem_bytes // 16)
    t = max(1, target_bytes // max(1, feat_p * itemsize))
    t = max(sublane, (t // sublane) * sublane)
    if t >= rows:
        # Force >= 2 grid steps when rows allow so the "parallel" row axis can
        # shard across v7x's two TensorCores (a grid of 1 leaves one TC idle).
        if rows > 2 * sublane:
            half = ((rows + 1) // 2 + sublane - 1) // sublane * sublane
            if half < rows:
                return half
        return rows  # full-extent block: always a legal BlockSpec
    return t


def layer_norm_pallas(x, gamma, beta, eps=1e-6, tile_rows=None):
    """LayerNorm over the last axis. x: (..., features). gamma/beta: (features,)."""
    orig_shape = x.shape
    feat = orig_shape[-1]
    assert feat > 1, "features must be > 1 (unbiased std divides by N-1)"
    assert gamma.shape == (feat,) and beta.shape == (feat,)

    x2d = x.reshape(-1, feat)
    rows = x2d.shape[0]
    itemsize = jnp.dtype(x.dtype).itemsize

    # Lane-dense padding of the feature axis to a multiple of 128.
    feat_p = ((feat + 127) // 128) * 128
    padded = feat_p != feat
    if padded:
        x2d = jnp.pad(x2d, ((0, 0), (0, feat_p - feat)))
    gamma2d = jnp.pad(gamma.astype(jnp.float32), (0, feat_p - feat)).reshape(1, feat_p)
    beta2d = jnp.pad(beta.astype(jnp.float32), (0, feat_p - feat)).reshape(1, feat_p)

    vmem_bytes = _vmem_capacity_bytes()
    if tile_rows is None:
        tile_rows = _choose_tile_rows(rows, feat_p, itemsize, vmem_bytes)
    else:
        sublane = max(8, 32 // itemsize)
        assert tile_rows == rows or tile_rows % sublane == 0, (
            f"tile_rows must be the full row count or a multiple of {sublane}"
        )

    kernel = functools.partial(
        _layernorm_kernel, eps=eps, n_feat=feat, padded=padded
    )

    grid = (pl.cdiv(rows, tile_rows),)

    # Per-step VMEM footprint: 2x input + 2x output double buffers (native
    # dtype) + f32 reduction scratch + resident gamma/beta, plus margin.
    tile_bytes = tile_rows * feat_p * itemsize
    footprint = 4 * tile_bytes + 2 * tile_rows * feat_p * 4 + 4 * feat_p * 4
    vmem_limit = int(min(vmem_bytes * 3 // 4,
                         max(footprint + (4 << 20), 32 << 20)))

    out2d = pl.pallas_call(
        kernel,
        out_shape=jax.ShapeDtypeStruct((rows, feat_p), x.dtype),
        grid_spec=pltpu.PrefetchScalarGridSpec(
            num_scalar_prefetch=0,
            grid=grid,
            in_specs=[
                pl.BlockSpec((tile_rows, feat_p), lambda i: (i, 0)),
                pl.BlockSpec((1, feat_p), lambda i: (0, 0)),
                pl.BlockSpec((1, feat_p), lambda i: (0, 0)),
            ],
            out_specs=pl.BlockSpec((tile_rows, feat_p), lambda i: (i, 0)),
        ),
        compiler_params=pltpu.CompilerParams(
            dimension_semantics=("parallel",),
            vmem_limit_bytes=vmem_limit,
        ),
    )(x2d, gamma2d, beta2d)

    if padded:
        out2d = out2d[:, :feat]
    return out2d.reshape(orig_shape)


def layer_norm_ref(x, gamma, beta, eps=1e-6):
    xf = x.astype(jnp.float32)
    mean = jnp.mean(xf, axis=-1, keepdims=True)
    diff = xf - mean
    var = jnp.sum(diff * diff, axis=-1, keepdims=True) / (x.shape[-1] - 1)
    std = jnp.sqrt(var)
    return (gamma * diff / (std + eps) + beta).astype(x.dtype)


if __name__ == "__main__":
    key = jax.random.PRNGKey(0)

    # Small shape consistent with the module: hidden=32 features, a couple of
    # leading dims.  Exercises the padded (feat < 128) lane-dense path.
    batch, seq, features = 2, 8, 32
    x = jax.random.normal(key, (batch, seq, features), dtype=jnp.float32)
    # nn.Parameter(torch.ones(features)) / torch.zeros(features)
    gamma = jnp.ones((features,), dtype=jnp.float32)
    beta = jnp.zeros((features,), dtype=jnp.float32)

    out = layer_norm_pallas(x, gamma, beta, eps=1e-6)
    out = jax.block_until_ready(out)
    ref = layer_norm_ref(x, gamma, beta, eps=1e-6)
    assert out.shape == x.shape
    assert jnp.allclose(out, ref, atol=1e-5, rtol=1e-5), "mismatch vs reference"

    # Also exercise the unpadded (feat % 128 == 0) lane-dense path.
    feat2 = 128
    x2 = jax.random.normal(jax.random.PRNGKey(1), (2, 4, feat2), dtype=jnp.float32)
    g2 = jnp.ones((feat2,), dtype=jnp.float32)
    b2 = jnp.zeros((feat2,), dtype=jnp.float32)
    out2 = jax.block_until_ready(layer_norm_pallas(x2, g2, b2, eps=1e-6))
    ref2 = layer_norm_ref(x2, g2, b2, eps=1e-6)
    assert jnp.allclose(out2, ref2, atol=1e-5, rtol=1e-5), "mismatch vs reference (128-wide)"

    print("KERNEL_OK")
</pallas_src>

<mosaic_0001>
module attributes {stable_mosaic.version = 11 : i64} {
  func.func @_layernorm_kernel(%arg0: i32, %arg1: memref<16x128xf32, #tpu.memory_space<vmem>>, %arg2: memref<1x128xf32, #tpu.memory_space<vmem>>, %arg3: memref<1x128xf32, #tpu.memory_space<vmem>>, %arg4: memref<16x128xf32, #tpu.memory_space<vmem>>) attributes {dimension_semantics = [#tpu.dimension_semantics<parallel>], iteration_bounds = array<i64: 1>, scalar_prefetch = 0 : i64, scratch_operands = 0 : i64, tpu.core_type = #tpu.core_type<tc>, window_params = [{transform_indices = @transform_0, window_bounds = array<i64: 16, 128>}, {pipeline_mode = #tpu.pipeline_mode<synchronous>, transform_indices = @transform_1, window_bounds = array<i64: 1, 128>}, {pipeline_mode = #tpu.pipeline_mode<synchronous>, transform_indices = @transform_2, window_bounds = array<i64: 1, 128>}, {transform_indices = @transform_3, window_bounds = array<i64: 16, 128>}]} {
    %c0 = arith.constant 0 : index
    %c0_0 = arith.constant 0 : index
    %0 = vector.load %arg1[%c0, %c0_0] : memref<16x128xf32, #tpu.memory_space<vmem>>, vector<16x128xf32>
    %cst = arith.constant dense<0.000000e+00> : vector<16xf32>
    %1 = vector.multi_reduction <add>, %0, %cst [1] : vector<16x128xf32> to vector<16xf32>
    %2 = vector.shape_cast %1 : vector<16xf32> to vector<16x1xf32>
    %cst_1 = arith.constant 3.125000e-02 : f32
    %3 = vector.broadcast %cst_1 : f32 to vector<16x1xf32>
    %4 = arith.mulf %2, %3 : vector<16x1xf32>
    %5 = vector.broadcast %4 : vector<16x1xf32> to vector<16x128xf32>
    %6 = arith.subf %0, %5 : vector<16x128xf32>
    %7 = vector.broadcast %4 : vector<16x1xf32> to vector<16x128xf32>
    %8 = arith.subf %0, %7 : vector<16x128xf32>
    %9 = arith.mulf %6, %8 : vector<16x128xf32>
    %10 = tpu.iota {dimensions = array<i32: 1>} : vector<1x128xi32>
    %c32_i32 = arith.constant 32 : i32
    %11 = vector.broadcast %c32_i32 : i32 to vector<1x128xi32>
    %12 = arith.cmpi slt, %10, %11 : vector<1x128xi32>
    %cst_2 = arith.constant 0.000000e+00 : f32
    %13 = vector.shape_cast %12 : vector<1x128xi1> to vector<1x128xi1>
    %14 = vector.broadcast %13 : vector<1x128xi1> to vector<16x128xi1>
    %15 = vector.broadcast %cst_2 : f32 to vector<16x128xf32>
    %16 = arith.select %14, %9, %15 : vector<16x128xi1>, vector<16x128xf32>
    %cst_3 = arith.constant dense<0.000000e+00> : vector<16xf32>
    %17 = vector.multi_reduction <add>, %16, %cst_3 [1] : vector<16x128xf32> to vector<16xf32>
    %18 = vector.shape_cast %17 : vector<16xf32> to vector<16x1xf32>
    %cst_4 = arith.constant 0.0322580636 : f32
    %19 = vector.broadcast %cst_4 : f32 to vector<16x1xf32>
    %20 = arith.mulf %18, %19 : vector<16x1xf32>
    %21 = math.sqrt %20 : vector<16x1xf32>
    %cst_5 = arith.constant 9.99999997E-7 : f32
    %22 = vector.broadcast %cst_5 : f32 to vector<16x1xf32>
    %23 = arith.addf %21, %22 : vector<16x1xf32>
    %24 = tpu.reciprocal %23 : vector<16x1xf32> -> vector<16x1xf32>
    %c0_6 = arith.constant 0 : index
    %c0_7 = arith.constant 0 : index
    %25 = vector.load %arg1[%c0_6, %c0_7] : memref<16x128xf32, #tpu.memory_space<vmem>>, vector<16x128xf32>
    %26 = vector.broadcast %4 : vector<16x1xf32> to vector<16x128xf32>
    %27 = arith.subf %25, %26 : vector<16x128xf32>
    %28 = vector.broadcast %24 : vector<16x1xf32> to vector<16x128xf32>
    %29 = arith.mulf %27, %28 : vector<16x128xf32>
    %c0_8 = arith.constant 0 : index
    %c0_9 = arith.constant 0 : index
    %30 = vector.load %arg2[%c0_8, %c0_9] : memref<1x128xf32, #tpu.memory_space<vmem>>, vector<1x128xf32>
    %31 = vector.broadcast %30 : vector<1x128xf32> to vector<16x128xf32>
    %32 = arith.mulf %29, %31 : vector<16x128xf32>
    %c0_10 = arith.constant 0 : index
    %c0_11 = arith.constant 0 : index
    %33 = vector.load %arg3[%c0_10, %c0_11] : memref<1x128xf32, #tpu.memory_space<vmem>>, vector<1x128xf32>
    %34 = vector.broadcast %33 : vector<1x128xf32> to vector<16x128xf32>
    %35 = arith.addf %32, %34 : vector<16x128xf32>
    %c0_12 = arith.constant 0 : index
    %c0_13 = arith.constant 0 : index
    %36 = vector.load %arg4[%c0_12, %c0_13] : memref<16x128xf32, #tpu.memory_space<vmem>>, vector<16x128xf32>
    tpu.vector_store %arg4[%c0_12, %c0_13], %35 {strides = array<i32>} : memref<16x128xf32, #tpu.memory_space<vmem>>, vector<16x128xf32>,
    return
  }
  func.func @transform_0(%arg0: i32) -> (i32, i32) {
    %c0_i32 = arith.constant 0 : i32
    %c0_i32_0 = arith.constant 0 : i32
    return %arg0, %c0_i32 : i32, i32
  }
  func.func @transform_1(%arg0: i32) -> (i32, i32) {
    %c0_i32 = arith.constant 0 : i32
    %c0_i32_0 = arith.constant 0 : i32
    %c0_i32_1 = arith.constant 0 : i32
    return %c0_i32, %c0_i32_0 : i32, i32
  }
  func.func @transform_2(%arg0: i32) -> (i32, i32) {
    %c0_i32 = arith.constant 0 : i32
    %c0_i32_0 = arith.constant 0 : i32
    %c0_i32_1 = arith.constant 0 : i32
    return %c0_i32, %c0_i32_0 : i32, i32
  }
  func.func @transform_3(%arg0: i32) -> (i32, i32) {
    %c0_i32 = arith.constant 0 : i32
    %c0_i32_0 = arith.constant 0 : i32
    return %arg0, %c0_i32 : i32, i32
  }
}

</mosaic_0001>

<bundles_post_ra>
// kernel: tpu_custom_call.1
= control target key start
LH: loop header
LB: loop body
LE: loop exit
PB: predicated region body
PF: predicated region fallthrough
CT: control target
= control target key end

     0   :  { %8 = vsyncpa [#allocation3], 0  ;;  %s233_s0 = inlined_call_operand.hbm [shape: f32[16,128], index: 0, kind: input, shape index: {}]   ;;  %s234_s1 = inlined_call_operand.vmem [shape: f32[1,128], index: 1, kind: input, shape index: {}]   ;;  %s235_s2 = inlined_call_operand.vmem [shape: f32[1,128], index: 2, kind: input, shape index: {}]   ;;  %s236_s3 = inlined_call_operand.hbm [shape: f32[16,128], index: 3, kind: output, shape index: {}]  }
   0x1   :  { %9 = vsyncpa [#allocation4], 0  ;;  %s173_s12 = smov [#allocation2]   ;;  %s125_s16 = scalar_lea.hbm %s233_s0, 256 }
   0x2   :  { %s15_s13 = sshll.u32 %s173_s12, 4  ;;  %p126_p0 = scmp.ne.s32.totalorder %s233_s0, %s125_s16  ;;  %s16_s13 = int_to_ptr.vmem [resolvable:$true] %s15_s13 }
   0x3   :  { %p129_p1 = scmp.lt.u32.totalorder %s125_s16, %s233_s0 }
   0x5   :  { %p131_p2 = pnand %p129_p1, %p126_p0 }
   0x7   :  { %134 = shalt.err (!%p131_p2)
}
   0x8   :  { %s135_s21 = scalar_lea.vmem %s16_s13, 256  ;;  %p140_p4 = scmp.lt.s32.totalorder %s16_s13, %s16_s13 }
   0x9   :  { %p136_p3 = scmp.ne.s32.totalorder %s16_s13, %s135_s21  ;;  %p141_p5 = scmp.lt.s32.totalorder %s135_s21, %s135_s21 }
   0xb   :  { %p142_p6 = por %p141_p5, %p140_p4 }
   0xd   :  { %p143_p7 = pnand %p142_p6, %p136_p3 }
   0xf   :  { %146 = shalt.err (!%p143_p7)
}
  0x10   :  { %s174_s22 = smov 128   ;;  %s175_s23 = smov 8  }
  0x11   :  { %21 = dma.hbm_to_vmem [thread:$0]  %s233_s0, 256, %s16_s13, [#allocation3], %s174_s22, %s174_s22, %s175_s23  }
  0x12   :  { %169 = dma.done.wait [#allocation3], 256  }
  0x13   :  { %170 = vsyncadd [#allocation3], 4294967040  ;;  %v29_v0 = vld [vmem:[#allocation2] sm:$0xff]  ;;  %v30_v1 = vld [vmem:[#allocation2 + $0x8] sm:$0xff]  ;;  %v41_v2 = vlaneseq  ;;  %s176_s29 = smov [#allocation5]  }
  0x14   :  { %31 = vadd.xlane.f32.xlu0 %v29_v0  ;;  %v111_v31 = vld [vmem:[%s234_s1] ss:$0 sm:$0xff]  ;;  %s99_s30 = sshll.u32 %s176_s29, 4  ;;  %s100_s30 = int_to_ptr.vmem [resolvable:$true] %s99_s30 }
  0x15   :  { %v42_v4 = vand.u32 127, %v41_v2  ;;  %v112_v33 = vld [vmem:[%s235_s2] ss:$0 sm:$0xff]  ;;  %s147_s4 = scalar_lea.vmem %s100_s30, 256  ;;  %p152_p9 = scmp.lt.s32.totalorder %s100_s30, %s100_s30 }
  0x16   :  { %p148_p8 = scmp.ne.s32.totalorder %s100_s30, %s147_s4  ;;  %p153_p10 = scmp.lt.s32.totalorder %s147_s4, %s147_s4 }
  0x17   :  { %vm43_vm0 = vcmp.lt.s32.totalorder %v42_v4, 32 }
  0x18   :  { %33 = vadd.xlane.f32.xlu0 %v30_v1  ;;  %p154_p11 = por %p153_p10, %p152_p9 }
  0x1a   :  { %p155_p12 = pnand %p154_p11, %p148_p8 }
  0xa1   :  { %v32_v3 = vpop.xlane.xlu0 %31 }
  0xa2   :  { %v35_v5 = vmul.f32 0.03125, %v32_v3 }
  0xa4   :  { %v37_v6 = vsub.f32 %v29_v0, %v35_v5 }
  0xa5   :  { %v34_v7 = vpop.xlane.xlu0 %33 }
  0xa6   :  { %v36_v8 = vmul.f32 0.03125, %v34_v7  ;;  %v39_v9 = vmul.f32 %v37_v6, %v37_v6 }
  0xa8   :  { %v38_v10 = vsub.f32 %v30_v1, %v36_v8  ;;  %v46_v11 = vsel %vm43_vm0, %v39_v9, 0.0 }
  0xa9   :  { %48 = vadd.xlane.f32.xlu1 %v46_v11 }
  0xaa   :  { %v40_v12 = vmul.f32 %v38_v10, %v38_v10 }
  0xac   :  { %v47_v13 = vsel %vm43_vm0, %v40_v12, 0.0 }
  0xad   :  { %50 = vadd.xlane.f32.xlu1 %v47_v13 }
 0x136   :  { %v49_v14 = vpop.xlane.xlu1 %48 }
 0x137   :  { %v52_v15 = vmul.f32 0.032258064, %v49_v14 }
 0x139   :  { %117 = vrsqrt.f32 %v52_v15  ;;  %vm56_vm1 = vcmp.eq.f32.partialorder %v52_v15, inf  ;;  %v59_v20 = vand.u32 2147483648, %v52_v15  ;;  %vm58_vm2 = vcmp.eq.f32.partialorder %v52_v15, 0.0 }
 0x13a   :  { %v51_v16 = vpop.xlane.xlu1 %50 }
 0x13b   :  { %v53_v17 = vmul.f32 0.032258064, %v51_v16 }
 0x13d   :  { %119 = vrsqrt.f32 %v53_v17  ;;  %vm63_vm3 = vcmp.eq.f32.partialorder %v53_v17, inf  ;;  %v66_v26 = vand.u32 2147483648, %v53_v17  ;;  %vm65_vm4 = vcmp.eq.f32.partialorder %v53_v17, 0.0 }
 0x143   :  { %v118_v18 = vpop.eup %117 }
 0x144   :  { %v55_v19 = vmul.f32 %v118_v18, %v52_v15 }
 0x146   :  { %v57_v21 = vsel %vm56_vm1, %v52_v15, %v55_v19 }
 0x147   :  { %v120_v22 = vpop.eup %119  ;;  %v60_v23 = vsel %vm58_vm2, %v59_v20, %v57_v21 }
 0x148   :  { %v62_v24 = vmul.f32 %v120_v22, %v53_v17  ;;  %v68_v25 = vadd.f32 1e-06, %v60_v23 }
 0x14a   :  { %v64_v27 = vsel %vm63_vm3, %v53_v17, %v62_v24  ;;  %121 = vrcp.f32 %v68_v25 }
 0x14b   :  { %v67_v28 = vsel %vm65_vm4, %v66_v26, %v64_v27 }
 0x14c   :  { %v69_v29 = vadd.f32 1e-06, %v67_v28 }
 0x14e   :  { %123 = vrcp.f32 %v69_v29 }
 0x154   :  { %v122_v30 = vpop.eup %121 }
 0x155   :  { %v72_v32 = vmul.f32 %v122_v30, %v37_v6 }
 0x157   :  { %v81_v34 = vmul.f32 %v111_v31, %v72_v32 }
 0x158   :  { %v124_v35 = vpop.eup %123 }
 0x159   :  { %v73_v36 = vmul.f32 %v124_v35, %v38_v10  ;;  %v90_v37 = vadd.f32 %v112_v33, %v81_v34 }
 0x15b   :  { %v82_v38 = vmul.f32 %v111_v31, %v73_v36  ;;  %92 = vst [vmem:[#allocation5] sm:$0xff] %v90_v37 }
 0x15d   :  { %v91_v39 = vadd.f32 %v112_v33, %v82_v38 }
 0x15f   :  { %93 = vst [vmem:[#allocation5 + $0x8] sm:$0xff] %v91_v39 }
 0x160   :  { %158 = shalt.err (!%p155_p12)
}
 0x161   :  { %s159_s5 = scalar_lea.hbm %s236_s3, 256 }
 0x162   :  { %p160_p13 = scmp.ne.s32.totalorder %s236_s3, %s159_s5  ;;  %p163_p0 = scmp.lt.u32.totalorder %s159_s5, %s236_s3 }
 0x164   :  { %p165_p1 = pnand %p163_p0, %p160_p13 }
 0x166   :  { %168 = shalt.err (!%p165_p1)
}
 0x167   :  { %105 = dma.vmem_to_hbm [thread:$0]  %s100_s30, 256, %s236_s3, [#allocation4], %s174_s22, %s174_s22, %s175_s23  }
 0x168   :  { %171 = dma.done.wait [#allocation4], 256  }
 0x169   :  { %172 = vsyncadd [#allocation4], 4294967040 }
 0x16a   :  { %109 = vsyncpa [#allocation3], 1 }
 0x16b   :  { %110 = vsyncpa [#allocation4], 1 }

</bundles_post_ra>
